<compile_context>
chip_gen: v7x
topology: tpu7x:2x2x1
jax: 0.10.0
libtpu: 0.0.40
codegen_flags: <defaults>
</compile_context>

<pallas_src>
import jax
import jax.numpy as jnp
from jax import lax
from jax.experimental import pallas as pl
from jax.experimental.pallas import tpu as pltpu


# ---------------------------------------------------------------------------
# Device introspection: how many TensorCores per chip can we shard over?
# ---------------------------------------------------------------------------
def _tensorcores_per_chip():
    """2 on v7x-like chips (2 TC/chip), else 1 (v5e / v6e are single-TC)."""
    try:
        kind = jax.devices()[0].device_kind.lower()
    except Exception:
        return 1
    return 2 if ("v7" in kind or "tpu7" in kind) else 1


# ---------------------------------------------------------------------------
# Pallas kernel factory: per-variable sublane-aligned sum of |pred - target|.
# ---------------------------------------------------------------------------
def _make_group_mae_kernel(n_vars, tm, n_blocks, blocks_per_core, two_axes,
                           tail_rows, may_have_oor):
    """Kernel over 2*n_vars inputs of shape (tm, 128).

    Accumulates, per variable, an (8, 128) partial sum of |pred - target|
    into the VMEM-resident output block of shape (n_vars, 8, 128).
    """
    has_partial_tail = tail_rows != tm

    def kernel(*refs):
        out_ref = refs[2 * n_vars]
        if two_axes:
            k = pl.program_id(1)                        # reduction axis
            block = pl.program_id(0) * blocks_per_core + k
        else:
            k = pl.program_id(0)
            block = k

        @pl.when(k == 0)
        def _init():
            out_ref[...] = jnp.zeros_like(out_ref)

        def accumulate(masked):
            if masked:
                # Static threshold: only the tail block pays the mask.
                valid = (lax.broadcasted_iota(jnp.int32, (tm, 128), 0)
                         < tail_rows)
            for v in range(n_vars):
                p = refs[2 * v][...]
                t = refs[2 * v + 1][...]
                # diff/abs in input dtype (bf16-friendly); accumulate in f32.
                d = jnp.abs(p - t).astype(jnp.float32)
                if masked:
                    d = jnp.where(valid, d, 0.0)
                # (tm,128) -> (tm//8, 8, 128) is layout-preserving; axis-0 sum
                # is plain vector adds (no cross-sublane reduce per step).
                out_ref[v] += jnp.sum(d.reshape(tm // 8, 8, 128), axis=0)

        if has_partial_tail:
            @pl.when(block == n_blocks - 1)
            def _tail():
                accumulate(True)

            @pl.when(block < n_blocks - 1)
            def _body():
                accumulate(False)
        elif may_have_oor:
            # Only possible on the multi-core grid when n_blocks % ncores != 0:
            # skip the clamped duplicate blocks entirely.
            @pl.when(block < n_blocks)
            def _body():
                accumulate(False)
        else:
            accumulate(False)

    return kernel


# ---------------------------------------------------------------------------
# Wrapper: per-variable MAE for one variable group.
# ---------------------------------------------------------------------------
def group_mae(preds, targs, *, tile_rows=1024, vmem_budget_bytes=24 << 20,
              min_rows_for_pallas=8):
    """preds / targs: lists of V arrays (identical shapes).

    Returns (V,) float32 per-variable mean absolute error.
    """
    n_vars = len(preds)
    assert n_vars == len(targs) and n_vars >= 1
    n_elems = preds[0].size
    for p, t in zip(preds, targs):
        assert p.shape == t.shape and p.size == n_elems

    flat_p = [p.reshape(-1) for p in preds]
    flat_t = [t.reshape(-1) for t in targs]

    n_rows = n_elems // 128           # number of full 128-lane rows
    n_main = n_rows * 128             # 128-aligned prefix length

    # Tiny group: fixed pallas_call launch cost would dominate -> plain JAX.
    if n_rows < min_rows_for_pallas:
        sums = jnp.stack([jnp.sum(jnp.abs(fp - ft).astype(jnp.float32))
                          for fp, ft in zip(flat_p, flat_t)])
        return sums / jnp.float32(n_elems)

    # Ragged tail (< 128 elements per variable): tiny plain-JAX sum instead of
    # materializing a padded copy of the whole tensor in HBM.
    if n_main != n_elems:
        tail = jnp.stack(
            [jnp.sum(jnp.abs(fp[n_main:] - ft[n_main:]).astype(jnp.float32))
             for fp, ft in zip(flat_p, flat_t)])
    else:
        tail = jnp.zeros((n_vars,), jnp.float32)

    ins = []
    for fp, ft in zip(flat_p, flat_t):
        if n_main != n_elems:
            fp = fp[:n_main]
            ft = ft[:n_main]
        ins.append(fp.reshape(n_rows, 128))
        ins.append(ft.reshape(n_rows, 128))

    # --- row tile: big, but keep the double-buffered input set under budget --
    itemsize = max(jnp.dtype(a.dtype).itemsize for a in ins)
    per_row_bytes = 2 * n_vars * 2 * 128 * itemsize     # inputs x dbl-buffer
    tm = min(tile_rows, max(8, vmem_budget_bytes // per_row_bytes))
    tm = max(8, (tm // 8) * 8)
    tm = min(tm, (n_rows // 8) * 8)                     # tm <= n_rows, 8-mult

    n_blocks = pl.cdiv(n_rows, tm)
    tail_rows = n_rows - (n_blocks - 1) * tm            # rows in last block

    # --- generation-aware grid -------------------------------------------
    ncores = min(_tensorcores_per_chip(), n_blocks)
    two_axes = ncores > 1
    if two_axes:
        blocks_per_core = pl.cdiv(n_blocks, ncores)
        may_have_oor = ncores * blocks_per_core != n_blocks
        grid = (ncores, blocks_per_core)

        def in_map(c, k):
            # Clamp so out-of-range tail-core blocks DMA in-bounds data; the
            # in-kernel `block < n_blocks` gate skips their compute.
            return (jnp.minimum(c * blocks_per_core + k, n_blocks - 1), 0)

        out_map = lambda c, k: (c, 0, 0, 0)
        dim_sem = (getattr(pltpu, "CORE_PARALLEL", "parallel"), "arbitrary")
    else:
        blocks_per_core = n_blocks
        may_have_oor = False
        grid = (n_blocks,)
        in_map = lambda k: (k, 0)
        out_map = lambda k: (0, 0, 0, 0)
        dim_sem = ("arbitrary",)

    kernel = _make_group_mae_kernel(n_vars, tm, n_blocks, blocks_per_core,
                                    two_axes, tail_rows, may_have_oor)

    partial = pl.pallas_call(
        kernel,
        out_shape=jax.ShapeDtypeStruct((ncores, n_vars, 8, 128), jnp.float32),
        grid_spec=pltpu.PrefetchScalarGridSpec(
            num_scalar_prefetch=0,
            grid=grid,
            in_specs=[pl.BlockSpec((tm, 128), in_map)] * (2 * n_vars),
            out_specs=pl.BlockSpec((None, n_vars, 8, 128), out_map),
        ),
        compiler_params=pltpu.CompilerParams(
            dimension_semantics=dim_sem,
            vmem_limit_bytes=32 << 20,
        ),
    )(*ins)

    # cross-core + 8x128 accumulator reduce + ragged tail + mean (tiny JAX)
    sums = partial.sum(axis=(0, 2, 3)) + tail
    return sums / jnp.float32(n_elems)


# ---------------------------------------------------------------------------
# Module-equivalent wrapper (matches AuroraMeanAbsoluteError.forward).
# ---------------------------------------------------------------------------
class AuroraMeanAbsoluteErrorPallas:
    def __init__(self, alpha=1 / 4, beta=1, variable_weights=None,
                 dataset_weights=None):
        self.surf_var_names = tuple(variable_weights["surface"].keys())
        self.atmos_var_names = tuple(variable_weights["atmospheric"].keys())
        self.surf_weights = jnp.array(
            [variable_weights["surface"][n] for n in self.surf_var_names],
            dtype=jnp.float32)
        self.atmos_weights = jnp.array(
            [variable_weights["atmospheric"][n] for n in self.atmos_var_names],
            dtype=jnp.float32)
        self.alpha = alpha
        self.beta = beta
        self.dataset_weights = (dataset_weights if dataset_weights
                                else {"default": 1.0})

    def __call__(self, pred, target, dataset_name="default"):
        gamma = self.dataset_weights.get(dataset_name, 1.0)

        # The torch reference stacks + squeezes singleton batch dims and takes
        # the per-variable mean over all remaining dims; with singleton batch
        # the per-variable value is mean(|pred - target|) over every element
        # of that variable, which is exactly what group_mae computes.
        # (Re-validate if batch > 1 — the torch reference's squeeze/mean dims
        # change meaning in that case.)
        surf_diffs = group_mae(
            [pred["surf_vars"][v] for v in self.surf_var_names],
            [target["surf_vars"][v] for v in self.surf_var_names])
        surface_loss = jnp.sum(surf_diffs * self.surf_weights) * self.alpha

        atmos_diffs = group_mae(
            [pred["atmos_vars"][v] for v in self.atmos_var_names],
            [target["atmos_vars"][v] for v in self.atmos_var_names])
        atmospheric_loss = jnp.sum(atmos_diffs * self.atmos_weights) * self.beta

        total_vars = len(self.surf_var_names) + len(self.atmos_var_names)
        return gamma / total_vars * (surface_loss + atmospheric_loss)


# ---------------------------------------------------------------------------
# Demo / self-check.
# ---------------------------------------------------------------------------
if __name__ == "__main__":
    key = jax.random.PRNGKey(0)

    variable_weights = {
        "surface": {"2t": 3.0, "10u": 0.77, "msl": 1.5},
        "atmospheric": {"z": 2.8, "u": 0.87, "v": 0.6, "t": 1.7},
    }
    dataset_weights = {"default": 1.0, "era5": 2.0}

    loss_fn = AuroraMeanAbsoluteErrorPallas(
        alpha=1 / 4, beta=1,
        variable_weights=variable_weights,
        dataset_weights=dataset_weights)

    # surf vars:  (1, 1, 17, 80) -> 1360 elems -> 10 aligned rows + 80-elem
    #             ragged tail (exercises partial tail block + tail path).
    # atmos vars: (1, 3, 24, 32) -> 2304 elems -> 18 rows, no ragged tail,
    #             2 row blocks (exercises the multi-block reduction).
    surf_shape = (1, 1, 17, 80)
    atmos_shape = (1, 3, 24, 32)

    def make_vars(key, names, shape):
        out = {}
        for n in names:
            key, k = jax.random.split(key)
            out[n] = jax.random.normal(k, shape, dtype=jnp.float32)
        return key, out

    key, pred_surf = make_vars(key, loss_fn.surf_var_names, surf_shape)
    key, targ_surf = make_vars(key, loss_fn.surf_var_names, surf_shape)
    key, pred_atmos = make_vars(key, loss_fn.atmos_var_names, atmos_shape)
    key, targ_atmos = make_vars(key, loss_fn.atmos_var_names, atmos_shape)

    pred = {"surf_vars": pred_surf, "atmos_vars": pred_atmos}
    target = {"surf_vars": targ_surf, "atmos_vars": targ_atmos}

    loss = jax.block_until_ready(loss_fn(pred, target, dataset_name="era5"))

    # ---- pure-JAX reference (mirrors the torch forward) ---------------------
    def ref_group(pd, td, names, weights):
        diffs = jnp.stack([jnp.mean(jnp.abs(pd[n] - td[n])) for n in names])
        return jnp.sum(diffs * weights)

    s_loss = ref_group(pred_surf, targ_surf, loss_fn.surf_var_names,
                       loss_fn.surf_weights) * loss_fn.alpha
    a_loss = ref_group(pred_atmos, targ_atmos, loss_fn.atmos_var_names,
                       loss_fn.atmos_weights) * loss_fn.beta
    total_vars = len(loss_fn.surf_var_names) + len(loss_fn.atmos_var_names)
    ref = 2.0 / total_vars * (s_loss + a_loss)

    assert jnp.allclose(loss, ref, rtol=1e-5, atol=1e-6), (loss, ref)
    print("KERNEL_OK")
</pallas_src>

<mosaic_0001>
module attributes {stable_mosaic.version = 11 : i64} {
  func.func @kernel(%arg0: i32, %arg1: memref<8x128xf32, #tpu.memory_space<vmem>>, %arg2: memref<8x128xf32, #tpu.memory_space<vmem>>, %arg3: memref<8x128xf32, #tpu.memory_space<vmem>>, %arg4: memref<8x128xf32, #tpu.memory_space<vmem>>, %arg5: memref<8x128xf32, #tpu.memory_space<vmem>>, %arg6: memref<8x128xf32, #tpu.memory_space<vmem>>, %arg7: memref<1x3x8x128xf32, #tpu.memory_space<vmem>>) attributes {dimension_semantics = [#tpu.dimension_semantics<arbitrary>], iteration_bounds = array<i64: 2>, scalar_prefetch = 0 : i64, scratch_operands = 0 : i64, tpu.core_type = #tpu.core_type<tc>, window_params = [{transform_indices = @transform_0, window_bounds = array<i64: 8, 128>}, {transform_indices = @transform_1, window_bounds = array<i64: 8, 128>}, {transform_indices = @transform_2, window_bounds = array<i64: 8, 128>}, {transform_indices = @transform_3, window_bounds = array<i64: 8, 128>}, {transform_indices = @transform_4, window_bounds = array<i64: 8, 128>}, {transform_indices = @transform_5, window_bounds = array<i64: 8, 128>}, {pipeline_mode = #tpu.pipeline_mode<synchronous>, transform_indices = @transform_6, window_bounds = array<i64: 1, 3, 8, 128>}]} {
    %c0_i32 = arith.constant 0 : i32
    %0 = arith.cmpi eq, %arg0, %c0_i32 : i32
    %1 = arith.extui %0 : i1 to i32
    %c0_i32_0 = arith.constant 0 : i32
    %2 = arith.cmpi ne, %1, %c0_i32_0 : i32
    scf.if %2 {
      %cst = arith.constant 0.000000e+00 : f32
      %9 = vector.broadcast %cst : f32 to vector<3x8x128xf32>
      %c0 = arith.constant 0 : index
      %c0_4 = arith.constant 0 : index
      %c0_5 = arith.constant 0 : index
      %c0_6 = arith.constant 0 : index
      %10 = vector.load %arg7[%c0, %c0_4, %c0_5, %c0_6] : memref<1x3x8x128xf32, #tpu.memory_space<vmem>>, vector<1x3x8x128xf32>
      %11 = vector.shape_cast %10 : vector<1x3x8x128xf32> to vector<3x8x128xf32>
      %12 = vector.shape_cast %9 : vector<3x8x128xf32> to vector<1x3x8x128xf32>
      tpu.vector_store %arg7[%c0, %c0_4, %c0_5, %c0_6], %12 {strides = array<i32>} : memref<1x3x8x128xf32, #tpu.memory_space<vmem>>, vector<1x3x8x128xf32>,
    } else {
    }
    %c1_i32 = arith.constant 1 : i32
    %3 = arith.cmpi eq, %arg0, %c1_i32 : i32
    %4 = arith.extui %3 : i1 to i32
    %c0_i32_1 = arith.constant 0 : i32
    %5 = arith.cmpi ne, %4, %c0_i32_1 : i32
    scf.if %5 {
      %9 = tpu.iota {dimensions = array<i32: 0>} : vector<8x128xi32>
      %c2_i32 = arith.constant 2 : i32
      %10 = vector.broadcast %c2_i32 : i32 to vector<8x128xi32>
      %11 = arith.cmpi slt, %9, %10 : vector<8x128xi32>
      %c0 = arith.constant 0 : index
      %c0_4 = arith.constant 0 : index
      %12 = vector.load %arg1[%c0, %c0_4] : memref<8x128xf32, #tpu.memory_space<vmem>>, vector<8x128xf32>
      %c0_5 = arith.constant 0 : index
      %c0_6 = arith.constant 0 : index
      %13 = vector.load %arg2[%c0_5, %c0_6] : memref<8x128xf32, #tpu.memory_space<vmem>>, vector<8x128xf32>
      %14 = arith.subf %12, %13 : vector<8x128xf32>
      %15 = math.absf %14 : vector<8x128xf32>
      %cst = arith.constant 0.000000e+00 : f32
      %16 = vector.broadcast %cst : f32 to vector<8x128xf32>
      %17 = arith.select %11, %15, %16 : vector<8x128xi1>, vector<8x128xf32>
      %c0_7 = arith.constant 0 : index
      %c0_8 = arith.constant 0 : index
      %c0_9 = arith.constant 0 : index
      %c0_10 = arith.constant 0 : index
      %18 = vector.load %arg7[%c0_7, %c0_8, %c0_9, %c0_10] : memref<1x3x8x128xf32, #tpu.memory_space<vmem>>, vector<1x1x8x128xf32>
      %19 = vector.shape_cast %18 : vector<1x1x8x128xf32> to vector<8x128xf32>
      %20 = vector.shape_cast %17 : vector<8x128xf32> to vector<1x8x128xf32>
      %cst_11 = arith.constant dense<0.000000e+00> : vector<8x128xf32>
      %21 = vector.multi_reduction <add>, %20, %cst_11 [0] : vector<1x8x128xf32> to vector<8x128xf32>
      %22 = arith.addf %19, %21 : vector<8x128xf32>
      %c0_12 = arith.constant 0 : index
      %c0_13 = arith.constant 0 : index
      %c0_14 = arith.constant 0 : index
      %c0_15 = arith.constant 0 : index
      %23 = vector.load %arg7[%c0_12, %c0_13, %c0_14, %c0_15] : memref<1x3x8x128xf32, #tpu.memory_space<vmem>>, vector<1x1x8x128xf32>
      %24 = vector.shape_cast %23 : vector<1x1x8x128xf32> to vector<8x128xf32>
      %25 = vector.shape_cast %22 : vector<8x128xf32> to vector<1x1x8x128xf32>
      tpu.vector_store %arg7[%c0_12, %c0_13, %c0_14, %c0_15], %25 {strides = array<i32>} : memref<1x3x8x128xf32, #tpu.memory_space<vmem>>, vector<1x1x8x128xf32>,
      %c0_16 = arith.constant 0 : index
      %c0_17 = arith.constant 0 : index
      %26 = vector.load %arg3[%c0_16, %c0_17] : memref<8x128xf32, #tpu.memory_space<vmem>>, vector<8x128xf32>
      %c0_18 = arith.constant 0 : index
      %c0_19 = arith.constant 0 : index
      %27 = vector.load %arg4[%c0_18, %c0_19] : memref<8x128xf32, #tpu.memory_space<vmem>>, vector<8x128xf32>
      %28 = arith.subf %26, %27 : vector<8x128xf32>
      %29 = math.absf %28 : vector<8x128xf32>
      %cst_20 = arith.constant 0.000000e+00 : f32
      %30 = vector.broadcast %cst_20 : f32 to vector<8x128xf32>
      %31 = arith.select %11, %29, %30 : vector<8x128xi1>, vector<8x128xf32>
      %c0_21 = arith.constant 0 : index
      %c1 = arith.constant 1 : index
      %c0_22 = arith.constant 0 : index
      %c0_23 = arith.constant 0 : index
      %32 = vector.load %arg7[%c0_21, %c1, %c0_22, %c0_23] : memref<1x3x8x128xf32, #tpu.memory_space<vmem>>, vector<1x1x8x128xf32>
      %33 = vector.shape_cast %32 : vector<1x1x8x128xf32> to vector<8x128xf32>
      %34 = vector.shape_cast %31 : vector<8x128xf32> to vector<1x8x128xf32>
      %cst_24 = arith.constant dense<0.000000e+00> : vector<8x128xf32>
      %35 = vector.multi_reduction <add>, %34, %cst_24 [0] : vector<1x8x128xf32> to vector<8x128xf32>
      %36 = arith.addf %33, %35 : vector<8x128xf32>
      %c0_25 = arith.constant 0 : index
      %c1_26 = arith.constant 1 : index
      %c0_27 = arith.constant 0 : index
      %c0_28 = arith.constant 0 : index
      %37 = vector.load %arg7[%c0_25, %c1_26, %c0_27, %c0_28] : memref<1x3x8x128xf32, #tpu.memory_space<vmem>>, vector<1x1x8x128xf32>
      %38 = vector.shape_cast %37 : vector<1x1x8x128xf32> to vector<8x128xf32>
      %39 = vector.shape_cast %36 : vector<8x128xf32> to vector<1x1x8x128xf32>
      tpu.vector_store %arg7[%c0_25, %c1_26, %c0_27, %c0_28], %39 {strides = array<i32>} : memref<1x3x8x128xf32, #tpu.memory_space<vmem>>, vector<1x1x8x128xf32>,
      %c0_29 = arith.constant 0 : index
      %c0_30 = arith.constant 0 : index
      %40 = vector.load %arg5[%c0_29, %c0_30] : memref<8x128xf32, #tpu.memory_space<vmem>>, vector<8x128xf32>
      %c0_31 = arith.constant 0 : index
      %c0_32 = arith.constant 0 : index
      %41 = vector.load %arg6[%c0_31, %c0_32] : memref<8x128xf32, #tpu.memory_space<vmem>>, vector<8x128xf32>
      %42 = arith.subf %40, %41 : vector<8x128xf32>
      %43 = math.absf %42 : vector<8x128xf32>
      %cst_33 = arith.constant 0.000000e+00 : f32
      %44 = vector.broadcast %cst_33 : f32 to vector<8x128xf32>
      %45 = arith.select %11, %43, %44 : vector<8x128xi1>, vector<8x128xf32>
      %c0_34 = arith.constant 0 : index
      %c2 = arith.constant 2 : index
      %c0_35 = arith.constant 0 : index
      %c0_36 = arith.constant 0 : index
      %46 = vector.load %arg7[%c0_34, %c2, %c0_35, %c0_36] : memref<1x3x8x128xf32, #tpu.memory_space<vmem>>, vector<1x1x8x128xf32>
      %47 = vector.shape_cast %46 : vector<1x1x8x128xf32> to vector<8x128xf32>
      %48 = vector.shape_cast %45 : vector<8x128xf32> to vector<1x8x128xf32>
      %cst_37 = arith.constant dense<0.000000e+00> : vector<8x128xf32>
      %49 = vector.multi_reduction <add>, %48, %cst_37 [0] : vector<1x8x128xf32> to vector<8x128xf32>
      %50 = arith.addf %47, %49 : vector<8x128xf32>
      %c0_38 = arith.constant 0 : index
      %c2_39 = arith.constant 2 : index
      %c0_40 = arith.constant 0 : index
      %c0_41 = arith.constant 0 : index
      %51 = vector.load %arg7[%c0_38, %c2_39, %c0_40, %c0_41] : memref<1x3x8x128xf32, #tpu.memory_space<vmem>>, vector<1x1x8x128xf32>
      %52 = vector.shape_cast %51 : vector<1x1x8x128xf32> to vector<8x128xf32>
      %53 = vector.shape_cast %50 : vector<8x128xf32> to vector<1x1x8x128xf32>
      tpu.vector_store %arg7[%c0_38, %c2_39, %c0_40, %c0_41], %53 {strides = array<i32>} : memref<1x3x8x128xf32, #tpu.memory_space<vmem>>, vector<1x1x8x128xf32>,
    } else {
    }
    %c1_i32_2 = arith.constant 1 : i32
    %6 = arith.cmpi slt, %arg0, %c1_i32_2 : i32
    %7 = arith.extui %6 : i1 to i32
    %c0_i32_3 = arith.constant 0 : i32
    %8 = arith.cmpi ne, %7, %c0_i32_3 : i32
    scf.if %8 {
      %c0 = arith.constant 0 : index
      %c0_4 = arith.constant 0 : index
      %9 = vector.load %arg1[%c0, %c0_4] : memref<8x128xf32, #tpu.memory_space<vmem>>, vector<8x128xf32>
      %c0_5 = arith.constant 0 : index
      %c0_6 = arith.constant 0 : index
      %10 = vector.load %arg2[%c0_5, %c0_6] : memref<8x128xf32, #tpu.memory_space<vmem>>, vector<8x128xf32>
      %11 = arith.subf %9, %10 : vector<8x128xf32>
      %12 = math.absf %11 : vector<8x128xf32>
      %c0_7 = arith.constant 0 : index
      %c0_8 = arith.constant 0 : index
      %c0_9 = arith.constant 0 : index
      %c0_10 = arith.constant 0 : index
      %13 = vector.load %arg7[%c0_7, %c0_8, %c0_9, %c0_10] : memref<1x3x8x128xf32, #tpu.memory_space<vmem>>, vector<1x1x8x128xf32>
      %14 = vector.shape_cast %13 : vector<1x1x8x128xf32> to vector<8x128xf32>
      %15 = vector.shape_cast %12 : vector<8x128xf32> to vector<1x8x128xf32>
      %cst = arith.constant dense<0.000000e+00> : vector<8x128xf32>
      %16 = vector.multi_reduction <add>, %15, %cst [0] : vector<1x8x128xf32> to vector<8x128xf32>
      %17 = arith.addf %14, %16 : vector<8x128xf32>
      %c0_11 = arith.constant 0 : index
      %c0_12 = arith.constant 0 : index
      %c0_13 = arith.constant 0 : index
      %c0_14 = arith.constant 0 : index
      %18 = vector.load %arg7[%c0_11, %c0_12, %c0_13, %c0_14] : memref<1x3x8x128xf32, #tpu.memory_space<vmem>>, vector<1x1x8x128xf32>
      %19 = vector.shape_cast %18 : vector<1x1x8x128xf32> to vector<8x128xf32>
      %20 = vector.shape_cast %17 : vector<8x128xf32> to vector<1x1x8x128xf32>
      tpu.vector_store %arg7[%c0_11, %c0_12, %c0_13, %c0_14], %20 {strides = array<i32>} : memref<1x3x8x128xf32, #tpu.memory_space<vmem>>, vector<1x1x8x128xf32>,
      %c0_15 = arith.constant 0 : index
      %c0_16 = arith.constant 0 : index
      %21 = vector.load %arg3[%c0_15, %c0_16] : memref<8x128xf32, #tpu.memory_space<vmem>>, vector<8x128xf32>
      %c0_17 = arith.constant 0 : index
      %c0_18 = arith.constant 0 : index
      %22 = vector.load %arg4[%c0_17, %c0_18] : memref<8x128xf32, #tpu.memory_space<vmem>>, vector<8x128xf32>
      %23 = arith.subf %21, %22 : vector<8x128xf32>
      %24 = math.absf %23 : vector<8x128xf32>
      %c0_19 = arith.constant 0 : index
      %c1 = arith.constant 1 : index
      %c0_20 = arith.constant 0 : index
      %c0_21 = arith.constant 0 : index
      %25 = vector.load %arg7[%c0_19, %c1, %c0_20, %c0_21] : memref<1x3x8x128xf32, #tpu.memory_space<vmem>>, vector<1x1x8x128xf32>
      %26 = vector.shape_cast %25 : vector<1x1x8x128xf32> to vector<8x128xf32>
      %27 = vector.shape_cast %24 : vector<8x128xf32> to vector<1x8x128xf32>
      %cst_22 = arith.constant dense<0.000000e+00> : vector<8x128xf32>
      %28 = vector.multi_reduction <add>, %27, %cst_22 [0] : vector<1x8x128xf32> to vector<8x128xf32>
      %29 = arith.addf %26, %28 : vector<8x128xf32>
      %c0_23 = arith.constant 0 : index
      %c1_24 = arith.constant 1 : index
      %c0_25 = arith.constant 0 : index
      %c0_26 = arith.constant 0 : index
      %30 = vector.load %arg7[%c0_23, %c1_24, %c0_25, %c0_26] : memref<1x3x8x128xf32, #tpu.memory_space<vmem>>, vector<1x1x8x128xf32>
      %31 = vector.shape_cast %30 : vector<1x1x8x128xf32> to vector<8x128xf32>
      %32 = vector.shape_cast %29 : vector<8x128xf32> to vector<1x1x8x128xf32>
      tpu.vector_store %arg7[%c0_23, %c1_24, %c0_25, %c0_26], %32 {strides = array<i32>} : memref<1x3x8x128xf32, #tpu.memory_space<vmem>>, vector<1x1x8x128xf32>,
      %c0_27 = arith.constant 0 : index
      %c0_28 = arith.constant 0 : index
      %33 = vector.load %arg5[%c0_27, %c0_28] : memref<8x128xf32, #tpu.memory_space<vmem>>, vector<8x128xf32>
      %c0_29 = arith.constant 0 : index
      %c0_30 = arith.constant 0 : index
      %34 = vector.load %arg6[%c0_29, %c0_30] : memref<8x128xf32, #tpu.memory_space<vmem>>, vector<8x128xf32>
      %35 = arith.subf %33, %34 : vector<8x128xf32>
      %36 = math.absf %35 : vector<8x128xf32>
      %c0_31 = arith.constant 0 : index
      %c2 = arith.constant 2 : index
      %c0_32 = arith.constant 0 : index
      %c0_33 = arith.constant 0 : index
      %37 = vector.load %arg7[%c0_31, %c2, %c0_32, %c0_33] : memref<1x3x8x128xf32, #tpu.memory_space<vmem>>, vector<1x1x8x128xf32>
      %38 = vector.shape_cast %37 : vector<1x1x8x128xf32> to vector<8x128xf32>
      %39 = vector.shape_cast %36 : vector<8x128xf32> to vector<1x8x128xf32>
      %cst_34 = arith.constant dense<0.000000e+00> : vector<8x128xf32>
      %40 = vector.multi_reduction <add>, %39, %cst_34 [0] : vector<1x8x128xf32> to vector<8x128xf32>
      %41 = arith.addf %38, %40 : vector<8x128xf32>
      %c0_35 = arith.constant 0 : index
      %c2_36 = arith.constant 2 : index
      %c0_37 = arith.constant 0 : index
      %c0_38 = arith.constant 0 : index
      %42 = vector.load %arg7[%c0_35, %c2_36, %c0_37, %c0_38] : memref<1x3x8x128xf32, #tpu.memory_space<vmem>>, vector<1x1x8x128xf32>
      %43 = vector.shape_cast %42 : vector<1x1x8x128xf32> to vector<8x128xf32>
      %44 = vector.shape_cast %41 : vector<8x128xf32> to vector<1x1x8x128xf32>
      tpu.vector_store %arg7[%c0_35, %c2_36, %c0_37, %c0_38], %44 {strides = array<i32>} : memref<1x3x8x128xf32, #tpu.memory_space<vmem>>, vector<1x1x8x128xf32>,
    } else {
    }
    return
  }
  func.func @transform_0(%arg0: i32) -> (i32, i32) {
    %c0_i32 = arith.constant 0 : i32
    %c0_i32_0 = arith.constant 0 : i32
    return %arg0, %c0_i32 : i32, i32
  }
  func.func @transform_1(%arg0: i32) -> (i32, i32) {
    %c0_i32 = arith.constant 0 : i32
    %c0_i32_0 = arith.constant 0 : i32
    return %arg0, %c0_i32 : i32, i32
  }
  func.func @transform_2(%arg0: i32) -> (i32, i32) {
    %c0_i32 = arith.constant 0 : i32
    %c0_i32_0 = arith.constant 0 : i32
    return %arg0, %c0_i32 : i32, i32
  }
  func.func @transform_3(%arg0: i32) -> (i32, i32) {
    %c0_i32 = arith.constant 0 : i32
    %c0_i32_0 = arith.constant 0 : i32
    return %arg0, %c0_i32 : i32, i32
  }
  func.func @transform_4(%arg0: i32) -> (i32, i32) {
    %c0_i32 = arith.constant 0 : i32
    %c0_i32_0 = arith.constant 0 : i32
    return %arg0, %c0_i32 : i32, i32
  }
  func.func @transform_5(%arg0: i32) -> (i32, i32) {
    %c0_i32 = arith.constant 0 : i32
    %c0_i32_0 = arith.constant 0 : i32
    return %arg0, %c0_i32 : i32, i32
  }
  func.func @transform_6(%arg0: i32) -> (i32, i32, i32, i32) {
    %c0_i32 = arith.constant 0 : i32
    %c0_i32_0 = arith.constant 0 : i32
    %c0_i32_1 = arith.constant 0 : i32
    %c0_i32_2 = arith.constant 0 : i32
    %c0_i32_3 = arith.constant 0 : i32
    return %c0_i32, %c0_i32_0, %c0_i32_1, %c0_i32_2 : i32, i32, i32, i32
  }
}

</mosaic_0001>

<bundles_post_ra>
// kernel: tpu_custom_call.1
= control target key start
LH: loop header
LB: loop body
LE: loop exit
PB: predicated region body
PF: predicated region fallthrough
CT: control target
= control target key end

     0   :  { %s1308_s0 = inlined_call_operand.hbm [shape: f32[10,128], index: 0, kind: input, shape index: {}]   ;;  %s1309_s1 = inlined_call_operand.hbm [shape: f32[10,128], index: 1, kind: input, shape index: {}]   ;;  %s1310_s2 = inlined_call_operand.hbm [shape: f32[10,128], index: 2, kind: input, shape index: {}]   ;;  %s1311_s3 = inlined_call_operand.hbm [shape: f32[10,128], index: 3, kind: input, shape index: {}]   ;;  %s1312_s4 = inlined_call_operand.hbm [shape: f32[10,128], index: 4, kind: input, shape index: {}]   ;;  %s1313_s5 = inlined_call_operand.vmem [shape: f32[10,128], index: 5, kind: input, shape index: {}]   ;;  %s1314_s6 = inlined_call_operand.hbm [shape: f32[1,3,8,128], index: 6, kind: output, shape index: {}]  }
   0x1   :  { %1319 = sst [smem:[#allocation16_spill]] %s1309_s1 }
   0x2   :  { %11 = vsyncpa [#allocation3], 0 }
   0x3   :  { %13 = vsyncpa [#allocation3 + $0x1], 0 }
   0x4   :  { %14 = vsyncpa [#allocation6], 0 }
   0x5   :  { %16 = vsyncpa [#allocation6 + $0x1], 0 }
   0x6   :  { %17 = vsyncpa [#allocation9], 0 }
   0x7   :  { %19 = vsyncpa [#allocation9 + $0x1], 0 }
   0x8   :  { %20 = vsyncpa [#allocation4], 0  ;;  %s1008_s21 = smov 0   ;;  %s1010_s22 = smov 0  }
   0x9   :  { %s1012_s23 = smov 0   ;;  %s1014_s24 = smov 0  }
   0xa LB: > { %s1027_s25 = sadd.s32 4294967295, %s962_s24   ;;  %s1030_s26 = sadd.s32 1, %s962_s24   ;;  %s962_s24 = sphi %s1014_s24, %s1337_s24   ;;  %s958_s23 = sphi %s1012_s23, %s1336_s23   ;;  %s954_s22 = sphi %s1010_s22, %s1335_s22   ;;  %s950_s21 = sphi %s1008_s21, %s1334_s21  }
   0xb   : > { %s30_s27 = ssub.s32 %s962_s24, %s1030_s26  ;;  %s33_s28 = sadd.s32 1, %s958_s23 }
   0xc   : > { %p31_p0 = scmp.eq.s32.totalorder %s30_s27, 0  ;;  %p40_p1 = scmp.ne.s32.totalorder %s958_s23, %s954_s22 }
   0xd   : > { %p41_p2 = scmp.eq.s32.totalorder %s962_s24, 0  ;;  %p46_p3 = scmp.ne.s32.totalorder %s954_s22, %s950_s21 }
   0xe   : > { %s1040_s29 = scalar_select %p31_p0, %s958_s23, %s33_s28  }
   0xf   : > { %p42_p4 = por %p41_p2, %p40_p1  ;;  %p47_p5 = scmp.eq.s32.totalorder %s1027_s25, 0 }
  0x10   : > { %p701_p6 = scmp.lt.s32.totalorder %s962_s24, 2  ;;  %s1316_s7 = sand.u32 1, %s958_s23  }
  0x11   : > { %p1044_p7 = por %p47_p5, %p46_p3  ;;  %s1051_s8 = sshll.u32 %s1316_s7, 3 }
  0x12   : > { %s1054_s9 = sshll.u32 %s962_s24, 7  ;;  %p1056_p8 = pnand %p701_p6, %p42_p4 }
  0x13   : > { %s1320_s30 = scalar_select %p1044_p7, 1, 0 }
  0x14   : > { %s1321_s10 = scalar_select %p1056_p8, 1, 0 }
  0x15   : > { %s239_s11 = sand.u32 1, %s962_s24   ;;  %s1322_s1 = sld [smem:[#allocation16_spill]] }
  0x16   : > { %s243_s15 = scalar_lea.vmem [#allocation5], %s1051_s8  ;;  %s1074_s17 = scalar_lea.sflag [#allocation6], %s239_s11 }
  0x17   : > { %s250_s16 = sshll.u32 %s243_s15, 4  ;;  %p1080_p12 = pneg %p1056_p8  ;;  %s1069_s16 = int_to_ptr.vmem [resolvable:$true] %s250_s16 }
  0x1b   : > { %s1065_s14 = scalar_lea.hbm %s1322_s1, %s1054_s9  ;;  %s745_s27 = scalar_lea.hbm %s1322_s1, 256 }
  0x1c   : > { %s740_s18 = scalar_lea.hbm %s1065_s14, 128  ;;  %p746_p1 = scmp.lt.u32.totalorder %s1065_s14, %s1322_s1 }
  0x1d   : > { %p741_p11 = scmp.ne.s32.totalorder %s1065_s14, %s740_s18  ;;  %p747_p2 = scmp.lt.u32.totalorder %s745_s27, %s740_s18 }
  0x1e   : > { %p749_p4 = scmp.lt.u32.totalorder %s740_s18, %s1065_s14 }
  0x1f   : > { %p743_p13 = pnand %p1080_p12, %p741_p11  ;;  %p748_p3 = por %p747_p2, %p746_p1 }
  0x21   : > { %p744_p0 = pneg %p743_p13  ;;  %p750_p5 = por %p749_p4, %p748_p3 }
  0x23   : > { %p751_p6 = pnand %p750_p5, %p744_p0 }
  0x25   : > { %754 = shalt.err (!%p751_p6)
}
  0x26   : > { %s755_s13 = scalar_lea.vmem %s1069_s16, 128  ;;  %s964_s15 = smov [#allocation5]  }
  0x27   : > { %p756_p11 = scmp.ne.s32.totalorder %s1069_s16, %s755_s13  ;;  %s760_s20 = sshll.u32 %s964_s15, 4  ;;  %s761_s20 = int_to_ptr.vmem [resolvable:$false] %s760_s20 }
  0x28   : > { %s762_s21 = scalar_lea.vmem %s761_s20, 256  ;;  %p763_p10 = scmp.lt.s32.totalorder %s1069_s16, %s761_s20 }
  0x29   : > { %p758_p13 = pnand %p756_p11, %p1080_p12  ;;  %p764_p7 = scmp.lt.s32.totalorder %s762_s21, %s755_s13 }
  0x2b   : > { %p759_p9 = pneg %p758_p13  ;;  %p765_p1 = por %p764_p7, %p763_p10 }
  0x2d   : > { %p766_p2 = pnand %p765_p1, %p759_p9 }
  0x2f   : > { %769 = shalt.err (!%p766_p2)
}
  0x30   : > { %691 = dma.hbm_to_vmem [thread:$0]  (!%p1056_p8), %s1065_s14, 128, %s1069_s16, %s1074_s17  }
  0x31   : > { %p1324_p0 = scmp.lt.s32.totalorder %s962_s24, 3  ;;  %p1325_p3 = scmp.ge.s32.totalorder %s962_s24, 1 }
  0x32   : > { %s1116_s12 = scalar_lea.hbm %s1311_s3, %s1054_s9  ;;  %s279_s13 = scalar_lea.vmem [#allocation8], %s1051_s8 }
  0x33   : > { %p1108_p4 = pnand %p1325_p3, %p1324_p0  ;;  %s286_s15 = sshll.u32 %s279_s13, 4  ;;  %s287_s15 = int_to_ptr.vmem [resolvable:$true] %s286_s15 }
  0x34   : > { %s1121_s14 = scalar_lea.sflag [#allocation9], %s239_s11  ;;  %s770_s16 = scalar_lea.hbm %s1116_s12, 128 }
  0x35   : > { %s1326_s18 = scalar_select %p1108_p4, 1, 0 }
  0x36   : > { %p771_p7 = scmp.ne.s32.totalorder %s1116_s12, %s770_s16  ;;  %s775_s27 = scalar_lea.hbm %s1311_s3, 256 }
  0x37   : > { %p776_p5 = scmp.lt.u32.totalorder %s1116_s12, %s1311_s3  ;;  %p777_p6 = scmp.lt.u32.totalorder %s775_s27, %s770_s16 }
  0x38   : > { %p773_p9 = pnand %p771_p7, %p1080_p12  ;;  %p779_p13 = scmp.lt.u32.totalorder %s770_s16, %s1116_s12 }
  0x39   : > { %p778_p11 = por %p777_p6, %p776_p5 }
  0x3a   : > { %p774_p10 = pneg %p773_p9 }
  0x3b   : > { %p780_p1 = por %p779_p13, %p778_p11 }
  0x3d   : > { %p781_p2 = pnand %p780_p1, %p774_p10 }
  0x3f   : > { %784 = shalt.err (!%p781_p2)
}
  0x40   : > { %s785_s24 = scalar_lea.vmem %s287_s15, 128  ;;  %s965_s11 = smov [#allocation8]  }
  0x41   : > { %p786_p0 = scmp.ne.s32.totalorder %s287_s15, %s785_s24  ;;  %s790_s13 = sshll.u32 %s965_s11, 4  ;;  %s791_s13 = int_to_ptr.vmem [resolvable:$false] %s790_s13 }
  0x42   : > { %s792_s20 = scalar_lea.vmem %s791_s13, 256  ;;  %p793_p9 = scmp.lt.s32.totalorder %s287_s15, %s791_s13 }
  0x43   : > { %p788_p3 = pnand %p786_p0, %p1080_p12  ;;  %p794_p4 = scmp.lt.s32.totalorder %s792_s20, %s785_s24 }
  0x45   : > { %p789_p7 = pneg %p788_p3  ;;  %p795_p8 = por %p794_p4, %p793_p9 }
  0x47   : > { %p796_p5 = pnand %p795_p8, %p789_p7 }
  0x49   : > { %799 = shalt.err (!%p796_p5)
}
  0x4a   : > { %p1327_p6 = scmp.ne.s32.totalorder %s1321_s10, 0  ;;  %s1145_s21 = scalar_lea.hbm %s1308_s0, %s1054_s9 }
  0x4b   : > { %s225_s27 = scalar_lea.vmem [#allocation2], %s1051_s8  ;;  %s1328_s24 = sand.u32 1, %s958_s23  }
  0x4c   : > { %697 = dma.hbm_to_vmem [thread:$0]  (!%p1327_p6), %s1116_s12, 128, %s287_s15, %s1121_s14  }
  0x4d   : > { %s232_s28 = sshll.u32 %s225_s27, 4  ;;  %s222_s11 = scalar_lea.sflag [#allocation3], %s1328_s24  ;;  %s233_s28 = int_to_ptr.vmem [resolvable:$true] %s232_s28 }
  0x4e   : > { %s800_s13 = scalar_lea.hbm %s1145_s21, 128  ;;  %s805_s20 = scalar_lea.hbm %s1308_s0, 256 }
  0x4f   : > { %p801_p8 = scmp.ne.s32.totalorder %s1145_s21, %s800_s13  ;;  %p806_p11 = scmp.lt.u32.totalorder %s1145_s21, %s1308_s0 }
  0x50   : > { %p807_p13 = scmp.lt.u32.totalorder %s805_s20, %s800_s13  ;;  %p809_p2 = scmp.lt.u32.totalorder %s800_s13, %s1145_s21 }
  0x51   : > { %p803_p4 = pnand %p801_p8, %p1080_p12 }
  0x52   : > { %p808_p1 = por %p807_p13, %p806_p11 }
  0x53   : > { %p804_p10 = pneg %p803_p4 }
  0x54   : > { %p810_p0 = por %p809_p2, %p808_p1 }
  0x56   : > { %p811_p3 = pnand %p810_p0, %p804_p10 }
  0x58   : > { %814 = shalt.err (!%p811_p3)
}
  0x59   : > { %s815_s27 = scalar_lea.vmem %s233_s28, 128  ;;  %s966_s24 = smov [#allocation2]  }
  0x5a   : > { %p816_p7 = scmp.ne.s32.totalorder %s233_s28, %s815_s27  ;;  %s820_s1 = sshll.u32 %s966_s24, 4  ;;  %s821_s1 = int_to_ptr.vmem [resolvable:$false] %s820_s1 }
  0x5b   : > { %s822_s12 = scalar_lea.vmem %s821_s1, 256  ;;  %p823_p8 = scmp.lt.s32.totalorder %s233_s28, %s821_s1 }
  0x5c   : > { %p818_p9 = pnand %p816_p7, %p1080_p12  ;;  %p824_p4 = scmp.lt.s32.totalorder %s822_s12, %s815_s27 }
  0x5e   : > { %p819_p5 = pneg %p818_p9  ;;  %p825_p6 = por %p824_p4, %p823_p8 }
  0x60   : > { %p826_p11 = pnand %p825_p6, %p819_p5 }
  0x62   : > { %829 = shalt.err (!%p826_p11)
}
  0x63   : > { %p1329_p13 = scmp.ne.s32.totalorder %s1321_s10, 0  ;;  %s1171_s20 = scalar_lea.hbm %s1310_s2, %s1054_s9 }
  0x64   : > { %s261_s1 = scalar_lea.vmem [#allocation7], %s1051_s8  ;;  %s830_s16 = scalar_lea.hbm %s1171_s20, 128 }
  0x65   : > { %688 = dma.hbm_to_vmem [thread:$0]  (!%p1329_p13), %s1145_s21, 128, %s233_s28, %s222_s11  }
  0x66   : > { %s268_s7 = sshll.u32 %s261_s1, 4  ;;  %p831_p6 = scmp.ne.s32.totalorder %s1171_s20, %s830_s16  ;;  %s269_s7 = int_to_ptr.vmem [resolvable:$true] %s268_s7 }
  0x67   : > { %s835_s21 = scalar_lea.hbm %s1310_s2, 256  ;;  %p836_p2 = scmp.lt.u32.totalorder %s1171_s20, %s1310_s2 }
  0x68   : > { %p833_p10 = pnand %p831_p6, %p1080_p12  ;;  %p837_p0 = scmp.lt.u32.totalorder %s835_s21, %s830_s16 }
  0x69   : > { %p839_p7 = scmp.lt.u32.totalorder %s830_s16, %s1171_s20 }
  0x6a   : > { %p834_p1 = pneg %p833_p10  ;;  %p838_p3 = por %p837_p0, %p836_p2 }
  0x6c   : > { %p840_p9 = por %p839_p7, %p838_p3 }
  0x6e   : > { %p841_p5 = pnand %p840_p9, %p834_p1 }
  0x70   : > { %844 = shalt.err (!%p841_p5)
}
  0x71   : > { %s845_s12 = scalar_lea.vmem %s269_s7, 128  ;;  %s967_s13 = smov [#allocation7]  }
  0x72   : > { %p846_p8 = scmp.ne.s32.totalorder %s269_s7, %s845_s12  ;;  %s850_s15 = sshll.u32 %s967_s13, 4  ;;  %s851_s15 = int_to_ptr.vmem [resolvable:$false] %s850_s15 }
  0x73   : > { %s852_s1 = scalar_lea.vmem %s851_s15, 256  ;;  %p853_p6 = scmp.lt.s32.totalorder %s269_s7, %s851_s15 }
  0x74   : > { %p848_p4 = pnand %p846_p8, %p1080_p12  ;;  %p854_p10 = scmp.lt.s32.totalorder %s852_s1, %s845_s12 }
  0x76   : > { %p849_p11 = pneg %p848_p4  ;;  %p855_p13 = por %p854_p10, %p853_p6 }
  0x78   : > { %p856_p0 = pnand %p855_p13, %p849_p11 }
  0x7a   : > { %859 = shalt.err (!%p856_p0)
}
  0x7b   : > { %p1330_p2 = scmp.ne.s32.totalorder %s1321_s10, 0  ;;  %s1196_s24 = scalar_lea.hbm %s1312_s4, %s1054_s9 }
  0x7c   : > { %s297_s21 = scalar_lea.vmem [#allocation10], %s1051_s8  ;;  %s860_s11 = scalar_lea.hbm %s1196_s24, 128 }
  0x7d   : > { %694 = dma.hbm_to_vmem [thread:$0]  (!%p1330_p2), %s1171_s20, 128, %s269_s7, %s1074_s17  }
  0x7e   : > { %s304_s28 = sshll.u32 %s297_s21, 4  ;;  %p861_p13 = scmp.ne.s32.totalorder %s1196_s24, %s860_s11  ;;  %s305_s28 = int_to_ptr.vmem [resolvable:$true] %s304_s28 }
  0x7f   : > { %s865_s17 = scalar_lea.hbm %s1312_s4, 256  ;;  %p866_p7 = scmp.lt.u32.totalorder %s1196_s24, %s1312_s4 }
  0x80   : > { %p863_p1 = pnand %p861_p13, %p1080_p12  ;;  %p867_p9 = scmp.lt.u32.totalorder %s865_s17, %s860_s11 }
  0x81   : > { %p869_p8 = scmp.lt.u32.totalorder %s860_s11, %s1196_s24 }
  0x82   : > { %p864_p3 = pneg %p863_p1  ;;  %p868_p5 = por %p867_p9, %p866_p7 }
  0x84   : > { %p870_p4 = por %p869_p8, %p868_p5 }
  0x86   : > { %p871_p11 = pnand %p870_p4, %p864_p3 }
  0x88   : > { %874 = shalt.err (!%p871_p11)
}
  0x89   : > { %s875_s8 = scalar_lea.vmem %s305_s28, 128  ;;  %s968_s9 = smov [#allocation10]  }
  0x8a   : > { %p876_p6 = scmp.ne.s32.totalorder %s305_s28, %s875_s8  ;;  %s880_s15 = sshll.u32 %s968_s9, 4  ;;  %s881_s15 = int_to_ptr.vmem [resolvable:$false] %s880_s15 }
  0x8b   : > { %s882_s1 = scalar_lea.vmem %s881_s15, 256  ;;  %p883_p13 = scmp.lt.s32.totalorder %s305_s28, %s881_s15 }
  0x8c   : > { %p878_p10 = pnand %p876_p6, %p1080_p12  ;;  %p884_p1 = scmp.lt.s32.totalorder %s882_s1, %s875_s8 }
  0x8e   : > { %p879_p0 = pneg %p878_p10  ;;  %p885_p2 = por %p884_p1, %p883_p13 }
  0x90   : > { %p886_p7 = pnand %p885_p2, %p879_p0 }
  0x92   : > { %889 = shalt.err (!%p886_p7)
}
  0x93   : > { %p1331_p9 = scmp.ne.s32.totalorder %s1321_s10, 0  ;;  %p1332_p3 = scmp.ne.s32.totalorder %s1326_s18, 0 }
  0x94   : > { %s322_s19 = sand.u32 (!%p1332_p3), 1, %s954_s22   ;;  %p1333_p12 = scmp.ne.s32.totalorder (!%p1332_p3), %s1320_s30, 0 }
  0x95   : > { %700 = dma.hbm_to_vmem [thread:$0]  (!%p1331_p9), %s1196_s24, 128, %s305_s28, %s1121_s14  }
  0x96   : > { %320 = sbr.rel (%p1332_p3) target bundleno = 225 (0xe1), region = 44  ;;  %s1220_s16 = sshll.u32 (!%p1332_p3), %s322_s19, 3 }
  0x97   : > { %s323_s27 = scalar_lea.sflag (!%p1332_p3), [#allocation3], %s322_s19  ;;  %s326_s21 = scalar_lea.vmem (!%p1332_p3), [#allocation2], %s1220_s16 }
  0x9d   : > { %933 = dma.done.wait (%p1333_p12), %s323_s27, 128  }
  0x9e   : > { %935 = vsyncadd (%p1333_p12), %s323_s27, 4294967168  ;;  %s331_s10 = sand.u32 1, %s1027_s25   ;;  %s335_s18 = scalar_lea.vmem [#allocation5], %s1220_s16 }
  0x9f   : > { %s332_s14 = scalar_lea.sflag [#allocation6], %s331_s10 }
  0xa0   : > { %937 = dma.done.wait (%p1333_p12), %s332_s14, 256  }
  0xa1   : > { %939 = vsyncadd (%p1333_p12), %s332_s14, 4294967040  ;;  %s344_s24 = scalar_lea.vmem [#allocation7], %s1220_s16  ;;  %s350_s28 = scalar_lea.sflag [#allocation9], %s331_s10 }
  0xa2   : > { %s353_s11 = scalar_lea.vmem [#allocation8], %s1220_s16 }
  0xa3   : > { %941 = dma.done.wait (%p1333_p12), %s350_s28, 256  }
  0xa4   : > { %943 = vsyncadd (%p1333_p12), %s350_s28, 4294967040  ;;  %p410_p2 = scmp.lt.s32.totalorder %s1027_s25, 1  ;;  %s362_s8 = scalar_lea.vmem [#allocation10], %s1220_s16 }
  0xa5   : > { %p664_p5 = scmp.ne.s32.totalorder %s1027_s25, 0 }
  0xa6   : > { %s411_s12 = scalar_select %p410_p2, %s1027_s25, 1 }
  0xa7   : > { %417 = sbr.rel (%p664_p5) target bundleno = 174 (0xae), region = 68  ;;  %v969_v0 = vmov (!%p664_p5), 0.0  }
  0xa8   : > { %s663_s13 = sshll.u32 %s411_s12, 3  ;;  %418 = vst [vmem:[#allocation11] sm:$0xff] (!%p664_p5), %v969_v0  ;;  %419 = vst [vmem:[#allocation11 + $0x8] sm:$0xff] (!%p664_p5), %v969_v0 }
  0xa9   : > { %s1244_s7 = scalar_lea.vmem %s1313_s5, %s663_s13  ;;  %420 = vst [vmem:[#allocation11 + $0x10] sm:$0xff] (!%p664_p5), %v969_v0 }
  0xae PF: > { %p665_p8 = scmp.ne.s32.totalorder %s1027_s25, 1 }
  0xaf   : > { %v425_v1 = vlaneseq (!%p665_p8)  ;;  %v428_v2 = vld [vmem:[%s326_s21] sm:$0xff] (!%p665_p8)  ;;  %v429_v3 = vld [vmem:[%s335_s18] sm:$0xff] (!%p665_p8) }
  0xb0   : > { %424 = sbr.rel (%p665_p8) target bundleno = 187 (0xbb), region = 72  ;;  %v430_v4 = vsub.f32 (!%p665_p8), %v428_v2, %v429_v3  ;;  %v437_v5 = vld [vmem:[%s344_s24] sm:$0xff] (!%p665_p8)  ;;  %v438_v6 = vld [vmem:[%s353_s11] sm:$0xff] (!%p665_p8) }
  0xb1   : > { %v426_v7 = vshrl.u32 (!%p665_p8), %v425_v1, 7  ;;  %v439_v8 = vsub.f32 (!%p665_p8), %v437_v5, %v438_v6  ;;  %v447_v9 = vld [vmem:[%s362_s8] sm:$0xff] (!%p665_p8)  ;;  %v433_v12 = vld [vmem:[#allocation11] sm:$0xff] (!%p665_p8)  ;;  %v443_v15 = vld [vmem:[#allocation11 + $0x8] sm:$0xff] (!%p665_p8) }
  0xb2   : > { %v448_v10 = vld [vmem:[%s1244_s7] sm:$0xff] (!%p665_p8)  ;;  %v431_v11 = vand.u32 (!%p665_p8), 2147483647, %v430_v4 }
  0xb3   : > { %v449_v13 = vsub.f32 (!%p665_p8), %v447_v9, %v448_v10  ;;  %vm427_vm0 = vcmp.lt.s32.totalorder (!%p665_p8), %v426_v7, 2  ;;  %v440_v14 = vand.u32 (!%p665_p8), 2147483647, %v439_v8  ;;  %v453_v18 = vld [vmem:[#allocation11 + $0x10] sm:$0xff] (!%p665_p8) }
  0xb4   : > { %v432_v16 = vsel (!%p665_p8), %vm427_vm0, %v431_v11, 0.0 }
  0xb5   : > { %v450_v17 = vand.u32 (!%p665_p8), 2147483647, %v449_v13  ;;  %v435_v19 = vadd.f32 (!%p665_p8), %v433_v12, %v432_v16  ;;  %v441_v20 = vsel (!%p665_p8), %vm427_vm0, %v440_v14, 0.0 }
  0xb6   : > { %v445_v21 = vadd.f32 (!%p665_p8), %v443_v15, %v441_v20 }
  0xb7   : > { %v451_v22 = vsel %vm427_vm0, %v450_v17, 0.0  ;;  %436 = vst [vmem:[#allocation11] sm:$0xff] %v435_v19 }
  0xb8   : > { %v455_v23 = vadd.f32 %v453_v18, %v451_v22  ;;  %446 = vst [vmem:[#allocation11 + $0x8] sm:$0xff] %v445_v21 }
  0xba   : > { %456 = vst [vmem:[#allocation11 + $0x10] sm:$0xff] %v455_v23 }
  0xbb PF: > { %p666_p4 = scmp.ge.s32.totalorder %s1027_s25, 1 }
  0xbc   : > { %v461_v24 = vld [vmem:[%s326_s21] sm:$0xff] (!%p666_p4)  ;;  %v462_v25 = vld [vmem:[%s335_s18] sm:$0xff] (!%p666_p4) }
  0xbd   : > { %460 = sbr.rel (%p666_p4) target bundleno = 199 (0xc7), region = 76  ;;  %v463_v26 = vsub.f32 (!%p666_p4), %v461_v24, %v462_v25  ;;  %v469_v27 = vld [vmem:[%s344_s24] sm:$0xff] (!%p666_p4)  ;;  %v470_v28 = vld [vmem:[%s353_s11] sm:$0xff] (!%p666_p4) }
  0xbe   : > { %v471_v30 = vsub.f32 (!%p666_p4), %v469_v27, %v470_v28  ;;  %v478_v31 = vld [vmem:[%s362_s8] sm:$0xff] (!%p666_p4) }
  0xbf   : > { %v479_v32 = vld [vmem:[%s1244_s7] sm:$0xff] (!%p666_p4)  ;;  %v464_v33 = vand.u32 (!%p666_p4), 2147483647, %v463_v26  ;;  %v474_v34 = vld [vmem:[#allocation11 + $0x8] sm:$0xff] (!%p666_p4) }
  0xc0   : > { %v480_v35 = vsub.f32 (!%p666_p4), %v478_v31, %v479_v32  ;;  %v472_v36 = vand.u32 (!%p666_p4), 2147483647, %v471_v30 }
  0xc1   : > { %v483_v37 = vld [vmem:[#allocation11 + $0x10] sm:$0xff] (!%p666_p4) }
  0xc2   : > { %v465_v29 = vld [vmem:[#allocation11] sm:$0xff] (!%p666_p4)  ;;  %v481_v39 = vand.u32 (!%p666_p4), 2147483647, %v480_v35  ;;  %v476_v40 = vadd.f32 (!%p666_p4), %v474_v34, %v472_v36 }
  0xc3   : > { %v467_v38 = vadd.f32 (!%p666_p4), %v465_v29, %v464_v33 }
  0xc4   : > { %v485_v41 = vadd.f32 %v483_v37, %v481_v39  ;;  %477 = vst [vmem:[#allocation11 + $0x8] sm:$0xff] %v476_v40 }
  0xc5   : > { %468 = vst [vmem:[#allocation11] sm:$0xff] %v467_v38 }
  0xc6   : > { %486 = vst [vmem:[#allocation11 + $0x10] sm:$0xff] %v485_v41 }
  0xc7 PF: > { %p702_p11 = scmp.eq.s32.totalorder %s1027_s25, 1  ;;  %s970_s30 = smov [#allocation11]  }
  0xc8   : > { %s493_s9 = sshll.u32 %s970_s30, 4  ;;  %s494_s9 = int_to_ptr.vmem [resolvable:$true] %s493_s9 }
  0xc9   : > { %s890_s15 = scalar_lea.vmem %s494_s9, 384  ;;  %p897_p13 = scmp.lt.s32.totalorder %s494_s9, %s494_s9 }
  0xca   : > { %p891_p6 = scmp.ne.s32.totalorder %s494_s9, %s890_s15  ;;  %p898_p1 = scmp.lt.s32.totalorder %s890_s15, %s890_s15 }
  0xcc   : > { %p892_p10 = pnand %p891_p6, %p702_p11  ;;  %p899_p7 = por %p898_p1, %p897_p13 }
  0xce   : > { %p893_p0 = pneg %p892_p10 }
  0xd0   : > { %p900_p9 = pnand %p899_p7, %p893_p0 }
  0xd2   : > { %903 = shalt.err (!%p900_p9)
}
  0xd3   : > { %s904_s16 = scalar_lea.hbm %s1314_s6, 384 }
  0xd4   : > { %p905_p3 = scmp.ne.s32.totalorder %s1314_s6, %s904_s16  ;;  %p910_p5 = scmp.lt.u32.totalorder %s904_s16, %s1314_s6 }
  0xd6   : > { %p906_p12 = pnand %p905_p3, %p702_p11 }
  0xd8   : > { %p907_p2 = pneg %p906_p12 }
  0xda   : > { %p912_p8 = pnand %p910_p5, %p907_p2 }
  0xdc   : > { %915 = shalt.err (!%p912_p8)
}
  0xdd   : > { %s971_s18 = smov 128   ;;  %s972_s24 = smov 8  }
  0xde   : > { %682 = dma.vmem_to_hbm [thread:$0]  (%p702_p11), %s494_s9, 384, %s1314_s6, [#allocation4], %s971_s18, %s971_s18, %s972_s24  }
  0xdf   : > { %945 = dma.done.wait (%p702_p11), [#allocation4], 384  }
  0xe0   : > { %947 = vsyncadd (%p702_p11), [#allocation4], 4294966912 }
  0xe1 PF: > { %p23_p4 = scmp.ge.s32.totalorder %s1030_s26, 4   ;;  %s1334_s21 = smov %s954_s22 }
  0xe2   : > { %s1335_s22 = smov %s958_s23  ;;  %s1336_s23 = smov %s1040_s29 }
  0xe3   : > { %s1337_s24 = smov %s1030_s26  ;;  %25 = sbr.rel (!%p23_p4) target bundleno = 10 (0xa), region = 148 }
  0xea   :  { %509 = vsyncpa [#allocation3], 1 }
  0xeb   :  { %511 = vsyncpa [#allocation3 + $0x1], 1 }
  0xec   :  { %512 = vsyncpa [#allocation6], 1 }
  0xed   :  { %514 = vsyncpa [#allocation6 + $0x1], 1 }
  0xee   :  { %515 = vsyncpa [#allocation9], 1 }
  0xef   :  { %517 = vsyncpa [#allocation9 + $0x1], 1 }
  0xf0   :  { %518 = vsyncpa [#allocation4], 1 }
  0xf1   :  { %520 = vsyncpa [#allocation4 + $0x1], 1 }

</bundles_post_ra>
